<compile_context>
chip_gen: v5e
topology: v5e:2x2
jax: 0.10.0
libtpu: 0.0.40
codegen_flags: <defaults>
</compile_context>

<pallas_src>
import jax
import jax.numpy as jnp
import numpy as np
from jax.experimental import pallas as pl
from jax.experimental.pallas import tpu as pltpu

NEG_SLOPE = 0.01  # nn.LeakyReLU() default negative_slope


def _conv_chain_kernel(x_ref, w_ref, b_ref, o_ref, act_a, act_b):
    # x_ref : (1, H, W*Cp)          bf16  input image, channels padded to Cp
    # w_ref : (depth, 3*W*Cp, W*Cp) bf16  per-layer ky-stacked lowered weights
    # b_ref : (depth, 1, W*Cp)      f32   per-layer bias tiled along W
    # o_ref : (1, H, W*Cp)          f32   output of the last layer
    # act_a/act_b: (H+2, W*Cp) f32 VMEM ping-pong activations (zero H-halo)
    depth = w_ref.shape[0]
    H = x_ref.shape[1]
    WC = x_ref.shape[2]

    # Zero only the halo rows; interior rows are fully rewritten every step
    # (by the x copy and by each dst write).  Unconditional on purpose: with a
    # "parallel" grid each core owns its own scratch, so a program_id(0)==0
    # guard would be wrong on multi-core parts.
    zero_row = jnp.zeros((1, WC), dtype=act_a.dtype)
    act_a[pl.ds(0, 1), :] = zero_row
    act_a[pl.ds(H + 1, 1), :] = zero_row
    act_b[pl.ds(0, 1), :] = zero_row
    act_b[pl.ds(H + 1, 1), :] = zero_row

    act_a[pl.ds(1, H), :] = x_ref[0].astype(act_a.dtype)

    bufs = (act_a, act_b)
    for layer in range(depth):                  # static unroll (depth small)
        src = bufs[layer % 2]
        dst = bufs[(layer + 1) % 2]
        # Lane-concat the three ky-shifted views -> (H, 3*WC); one bf16 MXU
        # dot per layer with K = 3*WC, f32 accumulation.
        lhs = jnp.concatenate(
            [src[pl.ds(0, H), :], src[pl.ds(1, H), :], src[pl.ds(2, H), :]],
            axis=-1).astype(w_ref.dtype)
        acc = jnp.dot(lhs, w_ref[layer], preferred_element_type=jnp.float32)
        acc = acc + b_ref[layer]
        acc = jnp.where(acc >= 0.0, acc, NEG_SLOPE * acc)   # LeakyReLU (f32)
        if layer == depth - 1:
            o_ref[0] = acc.astype(o_ref.dtype)     # lane-dense final store
        else:
            dst[pl.ds(1, H), :] = acc.astype(dst.dtype)


def _lowered_weights(w_hwio, b, W, Cp):
    """Fold the 3 kx taps, the channel dim and the zero W-padding of a 3x3
    'same' conv into a ky-stacked (3*W*Cp, W*Cp) matrix (host-side prep)."""
    cin, cout = w_hwio.shape[2], w_hwio.shape[3]
    wp = jnp.zeros((3, 3, Cp, Cp), jnp.float32).at[:, :, :cin, :cout].set(w_hwio)
    w_in = jnp.arange(W)[:, None]
    w_out = jnp.arange(W)[None, :]
    kx = w_in - w_out + 1                              # tap for (w_in, w_out)
    valid = (kx >= 0) & (kx <= 2)                      # boundary = zero pad
    t = wp[:, jnp.clip(kx, 0, 2)]                      # (ky, W_in, W_out, Cp, Cp)
    t = jnp.where(valid[None, :, :, None, None], t, 0.0)
    # (ky, w_in, c_in, w_out, c_out) -> K = ky-major 3*W*Cp, N = W*Cp
    t = jnp.transpose(t, (0, 1, 3, 2, 4)).reshape(3 * W * Cp, W * Cp)
    b_row = jnp.tile(jnp.pad(b, (0, Cp - cout)), W).reshape(1, W * Cp)
    return t, b_row


def conv_chain_forward(x_nchw, params):
    N, Cin, H, W = x_nchw.shape
    Cout = params[0][0].shape[-1]
    depth = len(params)
    Cp = max(Cin, Cout)          # common channel stride across all layers
    WC = W * Cp

    # NCHW -> NHWC -> channel-pad to Cp -> lane-dense (N, H, W*Cp), bf16
    x = jnp.transpose(x_nchw, (0, 2, 3, 1))
    x = jnp.pad(x, ((0, 0), (0, 0), (0, 0), (0, Cp - Cin)))
    x = x.reshape(N, H, WC).astype(jnp.bfloat16)

    tw, bw = [], []
    for w, b in params:
        t, br = _lowered_weights(w, b, W, Cp)
        tw.append(t)
        bw.append(br)
    tw = jnp.stack(tw).astype(jnp.bfloat16)   # (depth, 3*WC, WC)
    bw = jnp.stack(bw).astype(jnp.float32)    # (depth, 1, WC)

    # Actual lowered-matmul work, not the logical conv FLOPs.
    flops = 2 * N * H * (3 * WC) * WC * depth
    bytes_accessed = int(2 * x.size + 4 * N * H * WC + 2 * tw.size + 4 * bw.size)

    out = pl.pallas_call(
        _conv_chain_kernel,
        out_shape=jax.ShapeDtypeStruct((N, H, WC), jnp.float32),
        grid=(N,),
        in_specs=[
            pl.BlockSpec((1, H, WC), lambda n: (n, 0, 0)),
            pl.BlockSpec((depth, 3 * WC, WC), lambda n: (0, 0, 0)),
            pl.BlockSpec((depth, 1, WC), lambda n: (0, 0, 0)),
        ],
        out_specs=pl.BlockSpec((1, H, WC), lambda n: (n, 0, 0)),
        scratch_shapes=[
            pltpu.VMEM((H + 2, WC), jnp.float32),
            pltpu.VMEM((H + 2, WC), jnp.float32),
        ],
        compiler_params=pltpu.CompilerParams(
            dimension_semantics=("parallel",),
            vmem_limit_bytes=32 * 1024 * 1024),
        cost_estimate=pl.CostEstimate(
            flops=flops, transcendentals=0, bytes_accessed=bytes_accessed),
    )(x, tw, bw)

    out = out.reshape(N, H, W, Cp)[..., :Cout]
    return jnp.transpose(out, (0, 3, 1, 2))          # back to NCHW


def init_conv_chain_params(key, input_channels, output_channels, depth):
    """Deterministic synthetic init (PyTorch-style uniform fan-in scaling)."""
    params = []
    cin = input_channels
    for _ in range(depth):
        key, kw, kb = jax.random.split(key, 3)
        scale = 1.0 / float(np.sqrt(cin * 9))
        w = jax.random.uniform(kw, (3, 3, cin, output_channels),
                               jnp.float32, -scale, scale)
        b = jax.random.uniform(kb, (output_channels,),
                               jnp.float32, -scale, scale)
        params.append((w, b))
        cin = output_channels
    return params


def conv_chain_reference(x_nchw, params):
    """Pure-JAX f32 reference matching the PyTorch forward semantics."""
    x = jnp.transpose(x_nchw, (0, 2, 3, 1))
    for w, b in params:
        x = jax.lax.conv_general_dilated(
            x, w, window_strides=(1, 1), padding="SAME",
            dimension_numbers=("NHWC", "HWIO", "NHWC"))
        x = x + b
        x = jnp.where(x >= 0.0, x, NEG_SLOPE * x)
    return jnp.transpose(x, (0, 3, 1, 2))


if __name__ == "__main__":
    input_channels, output_channels, depth = 4, 8, 3
    key = jax.random.PRNGKey(0)
    key, kx, kp = jax.random.split(key, 3)

    x = jax.random.normal(kx, (2, input_channels, 16, 16), jnp.float32)  # NCHW
    params = init_conv_chain_params(kp, input_channels, output_channels, depth)

    fwd = jax.jit(conv_chain_forward)
    out = jax.block_until_ready(fwd(x, params))

    ref = jax.block_until_ready(conv_chain_reference(x, params))
    assert out.shape == (2, output_channels, 16, 16)
    # Tolerances account for bf16 weights/activations (f32 accumulation).
    np.testing.assert_allclose(np.asarray(out), np.asarray(ref),
                               rtol=5e-2, atol=3e-2)

    print("KERNEL_OK")
</pallas_src>

<mosaic_0001>
module attributes {stable_mosaic.version = 11 : i64} {
  func.func @_conv_chain_kernel(%arg0: i32, %arg1: memref<1x16x128xbf16, #tpu.memory_space<vmem>>, %arg2: memref<3x384x128xbf16, #tpu.memory_space<vmem>>, %arg3: memref<3x1x128xf32, #tpu.memory_space<vmem>>, %arg4: memref<1x16x128xf32, #tpu.memory_space<vmem>>, %arg5: memref<18x128xf32, #tpu.memory_space<vmem>>, %arg6: memref<18x128xf32, #tpu.memory_space<vmem>>) attributes {dimension_semantics = [#tpu.dimension_semantics<parallel>], iteration_bounds = array<i64: 2>, scalar_prefetch = 0 : i64, scratch_operands = 2 : i64, tpu.core_type = #tpu.core_type<tc>, window_params = [{transform_indices = @transform_0, window_bounds = array<i64: 1, 16, 128>}, {pipeline_mode = #tpu.pipeline_mode<synchronous>, transform_indices = @transform_1, window_bounds = array<i64: 3, 384, 128>}, {pipeline_mode = #tpu.pipeline_mode<synchronous>, transform_indices = @transform_2, window_bounds = array<i64: 3, 1, 128>}, {transform_indices = @transform_3, window_bounds = array<i64: 1, 16, 128>}]} {
    %cst = arith.constant 0.000000e+00 : f32
    %0 = vector.broadcast %cst : f32 to vector<1x128xf32>
    %c0 = arith.constant 0 : index
    %c0_0 = arith.constant 0 : index
    %1 = vector.load %arg5[%c0, %c0_0] : memref<18x128xf32, #tpu.memory_space<vmem>>, vector<1x128xf32>
    tpu.vector_store %arg5[%c0, %c0_0], %0 {strides = array<i32>} : memref<18x128xf32, #tpu.memory_space<vmem>>, vector<1x128xf32>,
    %c17 = arith.constant 17 : index
    %c0_1 = arith.constant 0 : index
    %2 = vector.load %arg5[%c17, %c0_1] : memref<18x128xf32, #tpu.memory_space<vmem>>, vector<1x128xf32>
    tpu.vector_store %arg5[%c17, %c0_1], %0 {strides = array<i32>} : memref<18x128xf32, #tpu.memory_space<vmem>>, vector<1x128xf32>,
    %c0_2 = arith.constant 0 : index
    %c0_3 = arith.constant 0 : index
    %3 = vector.load %arg6[%c0_2, %c0_3] : memref<18x128xf32, #tpu.memory_space<vmem>>, vector<1x128xf32>
    tpu.vector_store %arg6[%c0_2, %c0_3], %0 {strides = array<i32>} : memref<18x128xf32, #tpu.memory_space<vmem>>, vector<1x128xf32>,
    %c17_4 = arith.constant 17 : index
    %c0_5 = arith.constant 0 : index
    %4 = vector.load %arg6[%c17_4, %c0_5] : memref<18x128xf32, #tpu.memory_space<vmem>>, vector<1x128xf32>
    tpu.vector_store %arg6[%c17_4, %c0_5], %0 {strides = array<i32>} : memref<18x128xf32, #tpu.memory_space<vmem>>, vector<1x128xf32>,
    %c0_6 = arith.constant 0 : index
    %c0_7 = arith.constant 0 : index
    %c0_8 = arith.constant 0 : index
    %5 = vector.load %arg1[%c0_6, %c0_7, %c0_8] : memref<1x16x128xbf16, #tpu.memory_space<vmem>>, vector<1x16x128xbf16>
    %6 = vector.shape_cast %5 : vector<1x16x128xbf16> to vector<16x128xbf16>
    %7 = arith.extf %6 : vector<16x128xbf16> to vector<16x128xf32>
    %c1 = arith.constant 1 : index
    %c0_9 = arith.constant 0 : index
    %8 = vector.load %arg5[%c1, %c0_9] : memref<18x128xf32, #tpu.memory_space<vmem>>, vector<16x128xf32>
    tpu.vector_store %arg5[%c1, %c0_9], %7 {strides = array<i32>} : memref<18x128xf32, #tpu.memory_space<vmem>>, vector<16x128xf32>,
    %c0_10 = arith.constant 0 : index
    %c0_11 = arith.constant 0 : index
    %9 = vector.load %arg5[%c0_10, %c0_11] : memref<18x128xf32, #tpu.memory_space<vmem>>, vector<16x128xf32>
    %c1_12 = arith.constant 1 : index
    %c0_13 = arith.constant 0 : index
    %10 = vector.load %arg5[%c1_12, %c0_13] : memref<18x128xf32, #tpu.memory_space<vmem>>, vector<16x128xf32>
    %c2 = arith.constant 2 : index
    %c0_14 = arith.constant 0 : index
    %11 = vector.load %arg5[%c2, %c0_14] : memref<18x128xf32, #tpu.memory_space<vmem>>, vector<16x128xf32>
    %12 = tpu.concatenate %9, %10, %11 in 1 : vector<16x128xf32>, vector<16x128xf32>, vector<16x128xf32> -> vector<16x384xf32>
    %13 = arith.truncf %12 : vector<16x384xf32> to vector<16x384xbf16>
    %c0_15 = arith.constant 0 : index
    %c0_16 = arith.constant 0 : index
    %c0_17 = arith.constant 0 : index
    %14 = vector.load %arg2[%c0_15, %c0_16, %c0_17] : memref<3x384x128xbf16, #tpu.memory_space<vmem>>, vector<1x384x128xbf16>
    %15 = vector.shape_cast %14 : vector<1x384x128xbf16> to vector<384x128xbf16>
    %cst_18 = arith.constant dense<0.000000e+00> : vector<16x128xf32>
    %16 = tpu.matmul %13, %15, %cst_18 {dimension_numbers = #tpu.dot_dimension_numbers<[1], [0], [0], [1], [0, 0, 1, 1], [], []>} : vector<16x384xbf16>, vector<384x128xbf16>, vector<16x128xf32> -> vector<16x128xf32>
    %c0_19 = arith.constant 0 : index
    %c0_20 = arith.constant 0 : index
    %c0_21 = arith.constant 0 : index
    %17 = vector.load %arg3[%c0_19, %c0_20, %c0_21] : memref<3x1x128xf32, #tpu.memory_space<vmem>>, vector<1x1x128xf32>
    %18 = vector.shape_cast %17 : vector<1x1x128xf32> to vector<1x128xf32>
    %19 = vector.broadcast %18 : vector<1x128xf32> to vector<16x128xf32>
    %20 = arith.addf %16, %19 : vector<16x128xf32>
    %cst_22 = arith.constant 0.000000e+00 : f32
    %21 = vector.broadcast %cst_22 : f32 to vector<16x128xf32>
    %22 = arith.cmpf oge, %20, %21 : vector<16x128xf32>
    %cst_23 = arith.constant 0.00999999977 : f32
    %23 = vector.broadcast %cst_23 : f32 to vector<16x128xf32>
    %24 = arith.mulf %23, %20 : vector<16x128xf32>
    %25 = arith.select %22, %20, %24 : vector<16x128xi1>, vector<16x128xf32>
    %c1_24 = arith.constant 1 : index
    %c0_25 = arith.constant 0 : index
    %26 = vector.load %arg6[%c1_24, %c0_25] : memref<18x128xf32, #tpu.memory_space<vmem>>, vector<16x128xf32>
    tpu.vector_store %arg6[%c1_24, %c0_25], %25 {strides = array<i32>} : memref<18x128xf32, #tpu.memory_space<vmem>>, vector<16x128xf32>,
    %c0_26 = arith.constant 0 : index
    %c0_27 = arith.constant 0 : index
    %27 = vector.load %arg6[%c0_26, %c0_27] : memref<18x128xf32, #tpu.memory_space<vmem>>, vector<16x128xf32>
    %c1_28 = arith.constant 1 : index
    %c0_29 = arith.constant 0 : index
    %28 = vector.load %arg6[%c1_28, %c0_29] : memref<18x128xf32, #tpu.memory_space<vmem>>, vector<16x128xf32>
    %c2_30 = arith.constant 2 : index
    %c0_31 = arith.constant 0 : index
    %29 = vector.load %arg6[%c2_30, %c0_31] : memref<18x128xf32, #tpu.memory_space<vmem>>, vector<16x128xf32>
    %30 = tpu.concatenate %27, %28, %29 in 1 : vector<16x128xf32>, vector<16x128xf32>, vector<16x128xf32> -> vector<16x384xf32>
    %31 = arith.truncf %30 : vector<16x384xf32> to vector<16x384xbf16>
    %c1_32 = arith.constant 1 : index
    %c0_33 = arith.constant 0 : index
    %c0_34 = arith.constant 0 : index
    %32 = vector.load %arg2[%c1_32, %c0_33, %c0_34] : memref<3x384x128xbf16, #tpu.memory_space<vmem>>, vector<1x384x128xbf16>
    %33 = vector.shape_cast %32 : vector<1x384x128xbf16> to vector<384x128xbf16>
    %cst_35 = arith.constant dense<0.000000e+00> : vector<16x128xf32>
    %34 = tpu.matmul %31, %33, %cst_35 {dimension_numbers = #tpu.dot_dimension_numbers<[1], [0], [0], [1], [0, 0, 1, 1], [], []>} : vector<16x384xbf16>, vector<384x128xbf16>, vector<16x128xf32> -> vector<16x128xf32>
    %c1_36 = arith.constant 1 : index
    %c0_37 = arith.constant 0 : index
    %c0_38 = arith.constant 0 : index
    %35 = vector.load %arg3[%c1_36, %c0_37, %c0_38] : memref<3x1x128xf32, #tpu.memory_space<vmem>>, vector<1x1x128xf32>
    %36 = vector.shape_cast %35 : vector<1x1x128xf32> to vector<1x128xf32>
    %37 = vector.broadcast %36 : vector<1x128xf32> to vector<16x128xf32>
    %38 = arith.addf %34, %37 : vector<16x128xf32>
    %cst_39 = arith.constant 0.000000e+00 : f32
    %39 = vector.broadcast %cst_39 : f32 to vector<16x128xf32>
    %40 = arith.cmpf oge, %38, %39 : vector<16x128xf32>
    %cst_40 = arith.constant 0.00999999977 : f32
    %41 = vector.broadcast %cst_40 : f32 to vector<16x128xf32>
    %42 = arith.mulf %41, %38 : vector<16x128xf32>
    %43 = arith.select %40, %38, %42 : vector<16x128xi1>, vector<16x128xf32>
    %c1_41 = arith.constant 1 : index
    %c0_42 = arith.constant 0 : index
    %44 = vector.load %arg5[%c1_41, %c0_42] : memref<18x128xf32, #tpu.memory_space<vmem>>, vector<16x128xf32>
    tpu.vector_store %arg5[%c1_41, %c0_42], %43 {strides = array<i32>} : memref<18x128xf32, #tpu.memory_space<vmem>>, vector<16x128xf32>,
    %c0_43 = arith.constant 0 : index
    %c0_44 = arith.constant 0 : index
    %45 = vector.load %arg5[%c0_43, %c0_44] : memref<18x128xf32, #tpu.memory_space<vmem>>, vector<16x128xf32>
    %c1_45 = arith.constant 1 : index
    %c0_46 = arith.constant 0 : index
    %46 = vector.load %arg5[%c1_45, %c0_46] : memref<18x128xf32, #tpu.memory_space<vmem>>, vector<16x128xf32>
    %c2_47 = arith.constant 2 : index
    %c0_48 = arith.constant 0 : index
    %47 = vector.load %arg5[%c2_47, %c0_48] : memref<18x128xf32, #tpu.memory_space<vmem>>, vector<16x128xf32>
    %48 = tpu.concatenate %45, %46, %47 in 1 : vector<16x128xf32>, vector<16x128xf32>, vector<16x128xf32> -> vector<16x384xf32>
    %49 = arith.truncf %48 : vector<16x384xf32> to vector<16x384xbf16>
    %c2_49 = arith.constant 2 : index
    %c0_50 = arith.constant 0 : index
    %c0_51 = arith.constant 0 : index
    %50 = vector.load %arg2[%c2_49, %c0_50, %c0_51] : memref<3x384x128xbf16, #tpu.memory_space<vmem>>, vector<1x384x128xbf16>
    %51 = vector.shape_cast %50 : vector<1x384x128xbf16> to vector<384x128xbf16>
    %cst_52 = arith.constant dense<0.000000e+00> : vector<16x128xf32>
    %52 = tpu.matmul %49, %51, %cst_52 {dimension_numbers = #tpu.dot_dimension_numbers<[1], [0], [0], [1], [0, 0, 1, 1], [], []>} : vector<16x384xbf16>, vector<384x128xbf16>, vector<16x128xf32> -> vector<16x128xf32>
    %c2_53 = arith.constant 2 : index
    %c0_54 = arith.constant 0 : index
    %c0_55 = arith.constant 0 : index
    %53 = vector.load %arg3[%c2_53, %c0_54, %c0_55] : memref<3x1x128xf32, #tpu.memory_space<vmem>>, vector<1x1x128xf32>
    %54 = vector.shape_cast %53 : vector<1x1x128xf32> to vector<1x128xf32>
    %55 = vector.broadcast %54 : vector<1x128xf32> to vector<16x128xf32>
    %56 = arith.addf %52, %55 : vector<16x128xf32>
    %cst_56 = arith.constant 0.000000e+00 : f32
    %57 = vector.broadcast %cst_56 : f32 to vector<16x128xf32>
    %58 = arith.cmpf oge, %56, %57 : vector<16x128xf32>
    %cst_57 = arith.constant 0.00999999977 : f32
    %59 = vector.broadcast %cst_57 : f32 to vector<16x128xf32>
    %60 = arith.mulf %59, %56 : vector<16x128xf32>
    %61 = arith.select %58, %56, %60 : vector<16x128xi1>, vector<16x128xf32>
    %c0_58 = arith.constant 0 : index
    %c0_59 = arith.constant 0 : index
    %c0_60 = arith.constant 0 : index
    %62 = vector.load %arg4[%c0_58, %c0_59, %c0_60] : memref<1x16x128xf32, #tpu.memory_space<vmem>>, vector<1x16x128xf32>
    %63 = vector.shape_cast %62 : vector<1x16x128xf32> to vector<16x128xf32>
    %64 = vector.shape_cast %61 : vector<16x128xf32> to vector<1x16x128xf32>
    tpu.vector_store %arg4[%c0_58, %c0_59, %c0_60], %64 {strides = array<i32>} : memref<1x16x128xf32, #tpu.memory_space<vmem>>, vector<1x16x128xf32>,
    return
  }
  func.func @transform_0(%arg0: i32) -> (i32, i32, i32) {
    %c0_i32 = arith.constant 0 : i32
    %c0_i32_0 = arith.constant 0 : i32
    %c0_i32_1 = arith.constant 0 : i32
    return %arg0, %c0_i32, %c0_i32_0 : i32, i32, i32
  }
  func.func @transform_1(%arg0: i32) -> (i32, i32, i32) {
    %c0_i32 = arith.constant 0 : i32
    %c0_i32_0 = arith.constant 0 : i32
    %c0_i32_1 = arith.constant 0 : i32
    %c0_i32_2 = arith.constant 0 : i32
    return %c0_i32, %c0_i32_0, %c0_i32_1 : i32, i32, i32
  }
  func.func @transform_2(%arg0: i32) -> (i32, i32, i32) {
    %c0_i32 = arith.constant 0 : i32
    %c0_i32_0 = arith.constant 0 : i32
    %c0_i32_1 = arith.constant 0 : i32
    %c0_i32_2 = arith.constant 0 : i32
    return %c0_i32, %c0_i32_0, %c0_i32_1 : i32, i32, i32
  }
  func.func @transform_3(%arg0: i32) -> (i32, i32, i32) {
    %c0_i32 = arith.constant 0 : i32
    %c0_i32_0 = arith.constant 0 : i32
    %c0_i32_1 = arith.constant 0 : i32
    return %arg0, %c0_i32, %c0_i32_0 : i32, i32, i32
  }
}

</mosaic_0001>

<bundles_post_ra>
// kernel: tile.18
= control target key start
LH: loop header
LB: loop body
LE: loop exit
PB: predicated region body
PF: predicated region fallthrough
CT: control target
= control target key end

     0   :  { %s28_s0 = inlined_call_operand.vmem [shape: f32[8], index: 0, kind: input, shape index: {}]   ;;  %s29_s1 = inlined_call_operand.vmem [shape: f32[16,8], index: 1, kind: output, shape index: {}]  }
   0x1   :  { %v4_v0 = vld [vmem:[%s28_s0] ss:$0 sm:$0xff] }
   0x2   :  { %5 = vst [vmem:[%s29_s1] sm:$0xff] %v4_v0 }
   0x3   :  { %8 = vst [vmem:[%s29_s1 + $0x8] sm:$0xff] %v4_v0 }

// kernel: tile.27
= control target key start
LH: loop header
LB: loop body
LE: loop exit
PB: predicated region body
PF: predicated region fallthrough
CT: control target
= control target key end

     0   :  { %s131_s10 = smov 120   ;;  %s132_s11 = smov 104   ;;  %vm3_vm0 = vcmask 64512   ;;  %vm9_vm1 = vcmask 1048512   ;;  %vm15_vm2 = vcmask 982912   ;;  %vm21_vm3 = vcmask 917312   ;;  %s207_s0 = inlined_call_operand.vmem [shape: f32[16,8], index: 0, kind: input, shape index: {}]   ;;  %s208_s1 = inlined_call_operand.vmem [shape: f32[1,1,128], index: 1, kind: output, shape index: {}]  }
   0x1   :  { %v101_v0 = vld [vmem:[%s207_s0 + $0xf] sm:$0x1]   ;;  %v103_v1 = vld [vmem:[%s207_s0 + $0xd] sm:$0x1]   ;;  %v105_v2 = vld [vmem:[%s207_s0 + $0xb] sm:$0x1]  }
   0x2   :  { %7 = vrot.lane.b32.xlu0 %v101_v0, %s131_s10  ;;  %19 = vrot.lane.b32.xlu1 %v103_v1, %s132_s11  ;;  %s133_s14 = smov 88   ;;  %v102_v3 = vld [vmem:[%s207_s0 + $0xe] sm:$0x1]   ;;  %v104_v4 = vld [vmem:[%s207_s0 + $0xc] sm:$0x1]   ;;  %s134_s19 = smov 112  }
   0x3   :  { %31 = vrot.lane.b32.xlu2 %v105_v2, %s133_s14  ;;  %s135_s20 = smov 96   ;;  %v106_v5 = vld [vmem:[%s207_s0 + $0xa] sm:$0x1]   ;;  %s136_s23 = smov 80   ;;  %v107_v6 = vld [vmem:[%s207_s0 + $0x9] sm:$0x1]  }
   0x4   :  { %v108_v7 = vld [vmem:[%s207_s0 + $0x8] sm:$0x1]   ;;  %s137_s28 = smov 72   ;;  %s138_s29 = smov 64   ;;  %v109_v8 = vld [vmem:[%s207_s0 + $0x7] sm:$0x1]  }
   0x5   :  { %s139_s3 = smov 56   ;;  %v110_v9 = vld [vmem:[%s207_s0 + $0x6] sm:$0x1]   ;;  %v111_v10 = vld [vmem:[%s207_s0 + $0x5] sm:$0x1]   ;;  %s140_s8 = smov 48  }
   0x6   :  { %s141_s9 = smov 40   ;;  %v112_v11 = vld [vmem:[%s207_s0 + $0x4] sm:$0x1]   ;;  %s142_s12 = smov 32   ;;  %v113_v12 = vld [vmem:[%s207_s0 + $0x3] sm:$0x1]  }
   0x7   :  { %v114_v13 = vld [vmem:[%s207_s0 + $0x2] sm:$0x1]   ;;  %s143_s17 = smov 24   ;;  %s144_s18 = smov 16   ;;  %v115_v14 = vld [vmem:[%s207_s0 + $0x1] sm:$0x1]  }
   0x8   :  { %s145_s21 = smov 8   ;;  %v2_v15 = vld [vmem:[%s207_s0] sm:$0x1]   ;;  %vm27_vm4 = vcmask 851712   ;;  %vm33_vm5 = vcmask 786112   ;;  %vm39_vm6 = vcmask 720512  }
   0x9   :  { %4 = vst.msk [vmem:[#allocation0] sm:$0x1] %vm3_vm0, %v2_v15   ;;  %vm45_vm7 = vcmask 654912   ;;  %vm51_vm8 = vcmask 589312   ;;  %vm57_vm9 = vcmask 523712   ;;  %vm63_vm10 = vcmask 458112  }
   0xa   :  { %13 = vrot.lane.b32.xlu0 %v102_v3, %s134_s19  ;;  %25 = vrot.lane.b32.xlu1 %v104_v4, %s135_s20  ;;  %vm69_vm11 = vcmask 392512   ;;  %vm75_vm12 = vcmask 326912   ;;  %vm81_vm13 = vcmask 261312   ;;  %vm87_vm14 = vcmask 195712  }
   0xb   :  { %37 = vrot.lane.b32.xlu2 %v106_v5, %s136_s23  ;;  %vm93_vm15 = vcmask 130112  }
  0x12   :  { %43 = vrot.lane.b32.xlu0 %v107_v6, %s137_s28  ;;  %49 = vrot.lane.b32.xlu1 %v108_v7, %s138_s29 }
  0x13   :  { %55 = vrot.lane.b32.xlu2 %v109_v8, %s139_s3 }
  0x1a   :  { %61 = vrot.lane.b32.xlu0 %v110_v9, %s140_s8  ;;  %67 = vrot.lane.b32.xlu1 %v111_v10, %s141_s9 }
  0x1b   :  { %73 = vrot.lane.b32.xlu2 %v112_v11, %s142_s12 }
  0x22   :  { %79 = vrot.lane.b32.xlu0 %v113_v12, %s143_s17  ;;  %85 = vrot.lane.b32.xlu1 %v114_v13, %s144_s18 }
  0x23   :  { %91 = vrot.lane.b32.xlu2 %v115_v14, %s145_s21 }
  0x5d   :  { %v32_v16 = vpop.permute.xlu2 %31  }
  0x65   :  { %v38_v17 = vpop.permute.xlu2 %37  }
  0x6d   :  { %v56_v18 = vpop.permute.xlu2 %55  }
  0x74   :  { %v8_v19 = vpop.permute.xlu0 %7   ;;  %v20_v20 = vpop.permute.xlu1 %19  }
  0x75   :  { %10 = vst.msk [vmem:[#allocation0] sm:$0x1] %vm9_vm1, %v8_v19   ;;  %v74_v21 = vpop.permute.xlu2 %73  }
  0x7c   :  { %v14_v22 = vpop.permute.xlu0 %13   ;;  %v26_v23 = vpop.permute.xlu1 %25  }
  0x7d   :  { %16 = vst.msk [vmem:[#allocation0] sm:$0x1] %vm15_vm2, %v14_v22   ;;  %v92_v24 = vpop.permute.xlu2 %91  }
  0x7e   :  { %22 = vst.msk [vmem:[#allocation0] sm:$0x1] %vm21_vm3, %v20_v20  }
  0x7f   :  { %28 = vst.msk [vmem:[#allocation0] sm:$0x1] %vm27_vm4, %v26_v23  }
  0x80   :  { %34 = vst.msk [vmem:[#allocation0] sm:$0x1] %vm33_vm5, %v32_v16  }
  0x81   :  { %40 = vst.msk [vmem:[#allocation0] sm:$0x1] %vm39_vm6, %v38_v17  }
  0x84   :  { %v44_v25 = vpop.permute.xlu0 %43   ;;  %v50_v26 = vpop.permute.xlu1 %49  }
  0x85   :  { %46 = vst.msk [vmem:[#allocation0] sm:$0x1] %vm45_vm7, %v44_v25  }
  0x86   :  { %52 = vst.msk [vmem:[#allocation0] sm:$0x1] %vm51_vm8, %v50_v26  }
  0x87   :  { %58 = vst.msk [vmem:[#allocation0] sm:$0x1] %vm57_vm9, %v56_v18  }
  0x8c   :  { %v62_v27 = vpop.permute.xlu0 %61   ;;  %v68_v28 = vpop.permute.xlu1 %67  }
  0x8d   :  { %64 = vst.msk [vmem:[#allocation0] sm:$0x1] %vm63_vm10, %v62_v27  }
  0x8e   :  { %70 = vst.msk [vmem:[#allocation0] sm:$0x1] %vm69_vm11, %v68_v28  }
  0x8f   :  { %76 = vst.msk [vmem:[#allocation0] sm:$0x1] %vm75_vm12, %v74_v21  }
  0x94   :  { %v80_v29 = vpop.permute.xlu0 %79   ;;  %v86_v30 = vpop.permute.xlu1 %85  }
  0x95   :  { %82 = vst.msk [vmem:[#allocation0] sm:$0x1] %vm81_vm13, %v80_v29  }
  0x96   :  { %88 = vst.msk [vmem:[#allocation0] sm:$0x1] %vm87_vm14, %v86_v30  }
  0x97   :  { %94 = vst.msk [vmem:[#allocation0] sm:$0x1] %vm93_vm15, %v92_v24  }
  0x9e   :  { %v97_v31 = vld [vmem:[#allocation0] sm:$0x1] }
  0x9f   :  { %100 = vst [vmem:[%s208_s1] sm:$0x1] %v97_v31 }

// kernel: conv_chain_forward.1
= control target key start
LH: loop header
LB: loop body
LE: loop exit
PB: predicated region body
PF: predicated region fallthrough
CT: control target
= control target key end

     0   :  { %s1522_s12 = smov 0   ;;  %s1772_s0 = inlined_call_operand.vmem [shape: bf16[2,16,128], index: 0, kind: input, shape index: {}]   ;;  %s1773_s1 = inlined_call_operand.vmem [shape: bf16[3,384,128], index: 1, kind: input, shape index: {}]   ;;  %s1774_s2 = inlined_call_operand.vmem [shape: f32[3,1,128], index: 2, kind: input, shape index: {}]   ;;  %s1775_s3 = inlined_call_operand.vmem [shape: f32[2,16,128], index: 3, kind: output, shape index: {}]  }
   0x1 LB: > { %s1005_s13 = sadd.s32 4294967295, %s1499_s12   ;;  %p1009_p0 = scmp.ge.s32.totalorder %s1499_s12, 1  ;;  %s1499_s12 = sphi %s1522_s12, %s13_s12  }
   0x2   : > { %p137_p1 = scmp.lt.s32.totalorder %s1499_s12, 3 }
   0x4   : > { %p138_p2 = pnand %p1009_p0, %p137_p1 }
   0x5   : > { %p161_p3 = scmp.lt.s32.totalorder (!%p138_p2), %s1005_s13, 1 }
   0x6   : > { %141 = sbr.rel (%p138_p2) target bundleno = 509 (0x1fd), region = 32 }
   0xb   : > { %v1411_v0 = vld [vmem:[%s1773_s1 + $0x38] sm:$0xff]  ;;  %v1501_v3 = vmov 0.0   ;;  %v1410_v4 = vld [vmem:[%s1773_s1 + $0x30] sm:$0xff]  ;;  %s1777_s13 = smov (!%p161_p3, %s1005_s13), 1  ;;  %v1409_v7 = vld [vmem:[%s1773_s1 + $0x28] sm:$0xff] }
   0xc   : > { %v1419_v1 = vld [vmem:[%s1773_s1 + $0x78] sm:$0xff]  ;;  %171 = vst [vmem:[#allocation2] sm:$0x1] %v1501_v3  ;;  %386 = vmatpush.bf16.msra.mxu0 %v1411_v0  ;;  %v1418_v5 = vld [vmem:[%s1773_s1 + $0x70] sm:$0xff]  ;;  %s1402_s26 = sshll.u32 %s1777_s13, 3  ;;  %v1417_v8 = vld [vmem:[%s1773_s1 + $0x68] sm:$0xff] }
   0xd   : > { %v1427_v2 = vld [vmem:[%s1773_s1 + $0xb8] sm:$0xff]  ;;  %400 = vmatpush.bf16.msra.mxu1 %v1419_v1  ;;  %172 = vst [vmem:[#allocation2 + $0x11] sm:$0x1] %v1501_v3  ;;  %v1426_v6 = vld [vmem:[%s1773_s1 + $0xb0] sm:$0xff]  ;;  %s1554_s29 = scalar_lea.vmem %s1772_s0, %s1402_s26  ;;  %v1425_v9 = vld [vmem:[%s1773_s1 + $0xa8] sm:$0xff]  ;;  %s1403_s19 = sshll.u32 %s1777_s13, 4 }
   0xe   : > { %414 = vmatpush.bf16.msra.mxu2 %v1427_v2  ;;  %173 = vst [vmem:[#allocation3] sm:$0x1] %v1501_v3  ;;  %v1477_v10 = vld [vmem:[%s1554_s29] sm:$0xff]   ;;  %v1435_v11 = vld [vmem:[%s1773_s1 + $0xf8] sm:$0xff]  ;;  %v1406_v20 = vld [vmem:[%s1773_s1 + $0x10] sm:$0xff]  ;;  %s170_s22 = scalar_lea.vmem %s1775_s3, %s1403_s19 }
   0xf   : > { %174 = vst [vmem:[#allocation3 + $0x11] sm:$0x1] %v1501_v3  ;;  %v1408_v12 = vld [vmem:[%s1773_s1 + $0x20] sm:$0xff]  ;;  %v1478_v13 = vunpack.c.l.bf16 %v1477_v10  ;;  %v1479_v14 = vunpack.c.h.bf16 %v1477_v10  ;;  %643 = vmatpush.bf16.msra.mxu3 %v1435_v11  ;;  %v1407_v17 = vld [vmem:[%s1773_s1 + $0x18] sm:$0xff]  ;;  %v1414_v21 = vld [vmem:[%s1773_s1 + $0x50] sm:$0xff] }
  0x10   : > { %387 = vmatpush.bf16.msra.mxu0 %v1410_v4  ;;  %v1416_v15 = vld [vmem:[%s1773_s1 + $0x60] sm:$0xff]  ;;  %v1415_v18 = vld [vmem:[%s1773_s1 + $0x58] sm:$0xff]  ;;  %v1422_v22 = vld [vmem:[%s1773_s1 + $0x90] sm:$0xff] }
  0x11   : > { %401 = vmatpush.bf16.msra.mxu1 %v1418_v5  ;;  %v1424_v16 = vld [vmem:[%s1773_s1 + $0xa0] sm:$0xff]  ;;  %179 = vst [vmem:[#allocation2 + $0x1] sm:$0xff] %v1478_v13  ;;  %v1423_v19 = vld [vmem:[%s1773_s1 + $0x98] sm:$0xff]  ;;  %v1405_v23 = vld [vmem:[%s1773_s1 + $0x8] sm:$0xff] }
  0x12   : > { %415 = vmatpush.bf16.msra.mxu2 %v1426_v6  ;;  %180 = vst [vmem:[#allocation2 + $0x9] sm:$0xff] %v1479_v14  ;;  %v1413_v24 = vld [vmem:[%s1773_s1 + $0x48] sm:$0xff]  ;;  %v1404_v26 = vld [vmem:[%s1773_s1] sm:$0xff]  ;;  %v1443_v33 = vld [vmem:[%s1773_s1 + $0x138] sm:$0xff] }
  0x13   : > { %v1421_v25 = vld [vmem:[%s1773_s1 + $0x88] sm:$0xff]  ;;  %v1412_v27 = vld [vmem:[%s1773_s1 + $0x40] sm:$0xff]  ;;  %v1451_v34 = vld [vmem:[%s1773_s1 + $0x178] sm:$0xff] }
  0x14   : > { %388 = vmatpush.bf16.msra.mxu0 %v1409_v7  ;;  %v1420_v28 = vld [vmem:[%s1773_s1 + $0x80] sm:$0xff]  ;;  %v1442_v38 = vld [vmem:[%s1773_s1 + $0x130] sm:$0xff]  ;;  %v1441_v39 = vld [vmem:[%s1773_s1 + $0x128] sm:$0xff] }
  0x15   : > { %402 = vmatpush.bf16.msra.mxu1 %v1417_v8  ;;  %v1489_v36 = vld [vmem:[%s1554_s29] sm:$0xff]  ;;  %v1434_v40 = vld [vmem:[%s1773_s1 + $0xf0] sm:$0xff]  ;;  %v1433_v43 = vld [vmem:[%s1773_s1 + $0xe8] sm:$0xff] }
  0x16   : > { %416 = vmatpush.bf16.msra.mxu2 %v1425_v9  ;;  %v1450_v41 = vld [vmem:[%s1773_s1 + $0x170] sm:$0xff]  ;;  %v1440_v42 = vld [vmem:[%s1773_s1 + $0x120] sm:$0xff]  ;;  %644 = vmatpush.bf16.msra.mxu3 %v1434_v40  ;;  %v1449_v44 = vld [vmem:[%s1773_s1 + $0x168] sm:$0xff] }
  0x17   : > { %v1439_v45 = vld [vmem:[%s1773_s1 + $0x118] sm:$0xff]  ;;  %v1432_v46 = vld [vmem:[%s1773_s1 + $0xe0] sm:$0xff]  ;;  %v1438_v48 = vld [vmem:[%s1773_s1 + $0x110] sm:$0xff] }
  0x18   : > { %389 = vmatpush.bf16.msra.mxu0 %v1408_v12  ;;  %v181_v29 = vld [vmem:[#allocation2] sm:$0xff]  ;;  %v1431_v49 = vld [vmem:[%s1773_s1 + $0xd8] sm:$0xff]  ;;  %v1437_v51 = vld [vmem:[%s1773_s1 + $0x108] sm:$0xff] }
  0x19   : > { %403 = vmatpush.bf16.msra.mxu1 %v1416_v15  ;;  %v182_v30 = vld [vmem:[#allocation2 + $0x8] sm:$0xff]  ;;  %v1448_v47 = vld [vmem:[%s1773_s1 + $0x160] sm:$0xff]  ;;  %v1447_v50 = vld [vmem:[%s1773_s1 + $0x158] sm:$0xff] }
  0x1a   : > { %417 = vmatpush.bf16.msra.mxu2 %v1424_v16  ;;  %v185_v31 = vld [vmem:[#allocation2 + $0x2] sm:$0xff]  ;;  %v186_v32 = vld [vmem:[#allocation2 + $0xa] sm:$0xff]  ;;  %v187_v35 = vpack.c.bf16 %v182_v30, %v181_v29  ;;  %645 = vmatpush.bf16.msra.mxu3 %v1433_v43  ;;  %v1490_v59 = vld [vmem:[%s1774_s2] ss:$0 sm:$0xff] }
  0x1b   : > { %v189_v37 = vpack.c.bf16 %v186_v32, %v185_v31  ;;  %v1430_v52 = vld [vmem:[%s1773_s1 + $0xd0] sm:$0xff]  ;;  %v1436_v54 = vld [vmem:[%s1773_s1 + $0x100] sm:$0xff]  ;;  %v1429_v55 = vld [vmem:[%s1773_s1 + $0xc8] sm:$0xff] }
  0x1c   : > { %390 = vmatpush.bf16.msra.mxu0 %v1407_v17  ;;  %v1446_v53 = vld [vmem:[%s1773_s1 + $0x150] sm:$0xff]  ;;  %v1445_v56 = vld [vmem:[%s1773_s1 + $0x148] sm:$0xff]  ;;  %v1428_v57 = vld [vmem:[%s1773_s1 + $0xc0] sm:$0xff] }
  0x1d   : > { %404 = vmatpush.bf16.msra.mxu1 %v1415_v18  ;;  %v1444_v58 = vld [vmem:[%s1773_s1 + $0x140] sm:$0xff]  ;;  %v1463_v29 = vld [vmem:[%s1773_s1 + $0x1d8] sm:$0xff]  ;;  %v1462_v32 = vld [vmem:[%s1773_s1 + $0x1d0] sm:$0xff] }
  0x1e   : > { %418 = vmatpush.bf16.msra.mxu2 %v1423_v19  ;;  %646 = vmatpush.bf16.msra.mxu3 %v1432_v46  ;;  %v1467_v19 = vld [vmem:[%s1773_s1 + $0x1f8] sm:$0xff]  ;;  %v1456_v30 = vld [vmem:[%s1773_s1 + $0x1a0] sm:$0xff]  ;;  %v1469_v40 = vld [vmem:[%s1773_s1 + $0x208] sm:$0xff] }
  0x1f   : > { %v1472_v31 = vld [vmem:[%s1773_s1 + $0x220] sm:$0xff] }
  0x20   : > { %391 = vmatpush.bf16.msra.mxu0 %v1406_v20  ;;  %v1466_v20 = vld [vmem:[%s1773_s1 + $0x1f0] sm:$0xff]  ;;  %v1491_v43 = vld [vmem:[%s1774_s2 + $0x1] ss:$0 sm:$0xff] }
  0x21   : > { %405 = vmatpush.bf16.msra.mxu1 %v1414_v21  ;;  %v1459_v21 = vld [vmem:[%s1773_s1 + $0x1b8] sm:$0xff] }
  0x22   : > { %419 = vmatpush.bf16.msra.mxu2 %v1422_v22  ;;  %647 = vmatpush.bf16.msra.mxu3 %v1431_v49  ;;  %v1475_v22 = vld [vmem:[%s1773_s1 + $0x238] sm:$0xff] }
  0x24   : > { %392 = vmatpush.bf16.msra.mxu0 %v1405_v23  ;;  %v1465_v23 = vld [vmem:[%s1773_s1 + $0x1e8] sm:$0xff] }
  0x25   : > { %406 = vmatpush.bf16.msra.mxu1 %v1413_v24  ;;  %v1458_v24 = vld [vmem:[%s1773_s1 + $0x1b0] sm:$0xff] }
  0x26   : > { %420 = vmatpush.bf16.msra.mxu2 %v1421_v25  ;;  %648 = vmatpush.bf16.msra.mxu3 %v1430_v52  ;;  %v1474_v25 = vld [vmem:[%s1773_s1 + $0x230] sm:$0xff] }
  0x28   : > { %393 = vmatpush.bf16.msra.mxu0 %v1404_v26  ;;  %v1464_v26 = vld [vmem:[%s1773_s1 + $0x1e0] sm:$0xff] }
  0x29   : > { %407 = vmatpush.bf16.msra.mxu1 %v1412_v27  ;;  %v1457_v27 = vld [vmem:[%s1773_s1 + $0x1a8] sm:$0xff] }
  0x2a   : > { %421 = vmatpush.bf16.msra.mxu2 %v1420_v28  ;;  %649 = vmatpush.bf16.msra.mxu3 %v1429_v55  ;;  %v1473_v28 = vld [vmem:[%s1773_s1 + $0x228] sm:$0xff] }
  0x2b   : > { %394 = vmatmul.bf16.vlgmr.msra.gmra.mxu0 %v187_v35  ;;  %v1461_v35 = vld [vmem:[%s1773_s1 + $0x1c8] sm:$0xff] }
  0x2c   : > { %657 = vmatpush.bf16.msrb.mxu0 %v1443_v33  ;;  %408 = vmatmul.bf16.vlgmr.msra.gmra.mxu1 %v1489_v36  ;;  %v1455_v33 = vld [vmem:[%s1773_s1 + $0x198] sm:$0xff]  ;;  %v1454_v36 = vld [vmem:[%s1773_s1 + $0x190] sm:$0xff] }
  0x2d   : > { %671 = vmatpush.bf16.msrb.mxu1 %v1451_v34  ;;  %422 = vmatmul.bf16.vlgmr.msra.gmra.mxu2 %v189_v37  ;;  %v1471_v34 = vld [vmem:[%s1773_s1 + $0x218] sm:$0xff]  ;;  %v1470_v37 = vld [vmem:[%s1773_s1 + $0x210] sm:$0xff] }
  0x2e   : > { %650 = vmatpush.bf16.msra.mxu3 %v1428_v57  ;;  %900 = vmatpush.bf16.msrb.mxu2 %v1459_v21 }
  0x30   : > { %658 = vmatpush.bf16.msrb.mxu0 %v1442_v38  ;;  %v1460_v38 = vld [vmem:[%s1773_s1 + $0x1c0] sm:$0xff] }
  0x31   : > { %672 = vmatpush.bf16.msrb.mxu1 %v1450_v41  ;;  %v1452_v41 = vld [vmem:[%s1773_s1 + $0x180] sm:$0xff] }
  0x32   : > { %914 = vmatpush.bf16.msrb.mxu3 %v1467_v19  ;;  %901 = vmatpush.bf16.msrb.mxu2 %v1458_v24 }
  0x34   : > { %659 = vmatpush.bf16.msrb.mxu0 %v1441_v39  ;;  %v1453_v39 = vld [vmem:[%s1773_s1 + $0x188] sm:$0xff] }
  0x35   : > { %673 = vmatpush.bf16.msrb.mxu1 %v1449_v44 }
  0x36   : > { %915 = vmatpush.bf16.msrb.mxu3 %v1466_v20  ;;  %902 = vmatpush.bf16.msrb.mxu2 %v1457_v27 }
  0x38   : > { %660 = vmatpush.bf16.msrb.mxu0 %v1440_v42  ;;  %v1468_v42 = vld [vmem:[%s1773_s1 + $0x200] sm:$0xff] }
  0x39   : > { %674 = vmatpush.bf16.msrb.mxu1 %v1448_v47 }
  0x3a   : > { %916 = vmatpush.bf16.msrb.mxu3 %v1465_v23  ;;  %903 = vmatpush.bf16.msrb.mxu2 %v1456_v30 }
  0x3c   : > { %661 = vmatpush.bf16.msrb.mxu0 %v1439_v45 }
  0x3d   : > { %675 = vmatpush.bf16.msrb.mxu1 %v1447_v50 }
  0x3e   : > { %917 = vmatpush.bf16.msrb.mxu3 %v1464_v26  ;;  %904 = vmatpush.bf16.msrb.mxu2 %v1455_v33 }
  0x40   : > { %662 = vmatpush.bf16.msrb.mxu0 %v1438_v48 }
  0x41   : > { %676 = vmatpush.bf16.msrb.mxu1 %v1446_v53 }
  0x42   : > { %918 = vmatpush.bf16.msrb.mxu3 %v1463_v29  ;;  %905 = vmatpush.bf16.msrb.mxu2 %v1454_v36 }
  0x44   : > { %663 = vmatpush.bf16.msrb.mxu0 %v1437_v51 }
  0x45   : > { %677 = vmatpush.bf16.msrb.mxu1 %v1445_v56 }
  0x46   : > { %919 = vmatpush.bf16.msrb.mxu3 %v1462_v32  ;;  %906 = vmatpush.bf16.msrb.mxu2 %v1453_v39 }
  0x48   : > { %664 = vmatpush.bf16.msrb.mxu0 %v1436_v54 }
  0x49   : > { %678 = vmatpush.bf16.msrb.mxu1 %v1444_v58 }
  0x4a   : > { %920 = vmatpush.bf16.msrb.mxu3 %v1461_v35  ;;  %907 = vmatpush.bf16.msrb.mxu2 %v1452_v41 }
  0x4c   : > { %928 = vmatpush.bf16.msra.mxu0 %v1475_v22 }
  0x4e   : > { %921 = vmatpush.bf16.msrb.mxu3 %v1460_v38 }
  0x50   : > { %929 = vmatpush.bf16.msra.mxu0 %v1474_v25 }
  0x54   : > { %930 = vmatpush.bf16.msra.mxu0 %v1473_v28 }
  0x58   : > { %931 = vmatpush.bf16.msra.mxu0 %v1472_v31 }
  0x5c   : > { %932 = vmatpush.bf16.msra.mxu0 %v1471_v34 }
  0x60   : > { %933 = vmatpush.bf16.msra.mxu0 %v1470_v37 }
  0x64   : > { %934 = vmatpush.bf16.msra.mxu0 %v1469_v40 }
  0x68   : > { %935 = vmatpush.bf16.msra.mxu0 %v1468_v42 }
  0xa8   : > { %v395_v60 = vpop.f32.mrf.mxu0 }
  0xa9   : > { %v396_v61 = vadd.f32 %v1490_v59, %v395_v60  ;;  %v409_v62 = vpop.f32.mrf.mxu1 }
  0xab   : > { %v410_v63 = vadd.f32 %v409_v62, %v396_v61 }
  0xb0   : > { %v423_v0 = vpop.f32.mrf.mxu2  ;;  %v397_v2 = vpop.f32.mrf.mxu0 }
  0xb1   : > { %v424_v1 = vadd.f32 %v423_v0, %v410_v63  ;;  %v398_v4 = vadd.f32 %v1490_v59, %v397_v2  ;;  %v411_v6 = vpop.f32.mrf.mxu1 }
  0xb3   : > { %vm428_vm0 = vcmp.ge.f32.partialorder %v424_v1, 0.0  ;;  %v430_v3 = vmul.f32 0.01, %v424_v1  ;;  %v412_v7 = vadd.f32 %v411_v6, %v398_v4 }
  0xb5   : > { %v432_v5 = vsel %vm428_vm0, %v424_v1, %v430_v3  ;;  %v1492_v3 = vld [vmem:[%s1774_s2 + $0x2] ss:$0 sm:$0xff] }
  0xb6   : > { %434 = vst [vmem:[#allocation3 + $0x1] sm:$0xff] %v432_v5 }
  0xb8   : > { %v425_v8 = vpop.f32.mrf.mxu2 }
  0xb9   : > { %v426_v9 = vadd.f32 %v425_v8, %v412_v7 }
  0xbb   : > { %vm429_vm1 = vcmp.ge.f32.partialorder %v426_v9, 0.0  ;;  %v431_v10 = vmul.f32 0.01, %v426_v9 }
  0xbd   : > { %v433_v11 = vsel %vm429_vm1, %v426_v9, %v431_v10  ;;  %v436_v13 = vld [vmem:[#allocation3] sm:$0xff] }
  0xbe   : > { %435 = vst [vmem:[#allocation3 + $0x9] sm:$0xff] %v433_v11  ;;  %v443_v12 = vpack.c.bf16 %v433_v11, %v432_v5 }
  0xc0   : > { %665 = vmatmul.bf16.vlgmr.msrb.gmra.mxu0 %v443_v12 }
  0xc5   : > { %v437_v14 = vld [vmem:[#allocation3 + $0x8] sm:$0xff] }
  0xc6   : > { %v440_v15 = vld [vmem:[#allocation3 + $0x2] sm:$0xff]  ;;  %v441_v16 = vld [vmem:[#allocation3 + $0xa] sm:$0xff]  ;;  %v442_v17 = vpack.c.bf16 %v437_v14, %v436_v13 }
  0xc7   : > { %v444_v18 = vpack.c.bf16 %v441_v16, %v440_v15 }
  0xc8   : > { %651 = vmatmul.bf16.vlgmr.msra.gmra.mxu3 %v442_v17 }
  0xc9   : > { %679 = vmatmul.bf16.vlgmr.msrb.gmra.mxu1 %v444_v18 }
 0x13d   : > { %v666_v44 = vpop.f32.mrf.mxu0 }
 0x145   : > { %v668_v54 = vpop.f32.mrf.mxu0 }
 0x146   : > { %v680_v47 = vpop.f32.mrf.mxu1 }
 0x14b   : > { %v652_v45 = vpop.f32.mrf.mxu3 }
 0x14c   : > { %v653_v46 = vadd.f32 %v1491_v43, %v652_v45 }
 0x14e   : > { %v667_v48 = vadd.f32 %v666_v44, %v653_v46  ;;  %v682_v56 = vpop.f32.mrf.mxu1 }
 0x150   : > { %v681_v49 = vadd.f32 %v680_v47, %v667_v48 }
 0x152   : > { %vm685_vm2 = vcmp.ge.f32.partialorder %v681_v49, 0.0  ;;  %v687_v50 = vmul.f32 0.01, %v681_v49 }
 0x153   : > { %v654_v51 = vpop.f32.mrf.mxu3 }
 0x154   : > { %v689_v52 = vsel %vm685_vm2, %v681_v49, %v687_v50  ;;  %v655_v53 = vadd.f32 %v1491_v43, %v654_v51 }
 0x155   : > { %691 = vst [vmem:[#allocation2 + $0x1] sm:$0xff] %v689_v52 }
 0x156   : > { %v669_v55 = vadd.f32 %v668_v54, %v655_v53 }
 0x158   : > { %v683_v57 = vadd.f32 %v682_v56, %v669_v55 }
 0x15a   : > { %vm686_vm3 = vcmp.ge.f32.partialorder %v683_v57, 0.0  ;;  %v688_v58 = vmul.f32 0.01, %v683_v57 }
 0x15c   : > { %v690_v59 = vsel %vm686_vm3, %v683_v57, %v688_v58  ;;  %v693_v61 = vld [vmem:[#allocation2] sm:$0xff] }
 0x15d   : > { %692 = vst [vmem:[#allocation2 + $0x9] sm:$0xff] %v690_v59  ;;  %v700_v60 = vpack.c.bf16 %v690_v59, %v689_v52 }
 0x15f   : > { %922 = vmatmul.bf16.vlgmr.msrb.gmra.mxu3 %v700_v60 }
 0x164   : > { %v694_v62 = vld [vmem:[#allocation2 + $0x8] sm:$0xff] }
 0x165   : > { %v697_v63 = vld [vmem:[#allocation2 + $0x2] sm:$0xff]  ;;  %v698_v0 = vld [vmem:[#allocation2 + $0xa] sm:$0xff]  ;;  %v699_v1 = vpack.c.bf16 %v694_v62, %v693_v61 }
 0x166   : > { %v701_v2 = vpack.c.bf16 %v698_v0, %v697_v63 }
 0x167   : > { %908 = vmatmul.bf16.vlgmr.msrb.gmra.mxu2 %v699_v1 }
 0x168   : > { %936 = vmatmul.bf16.vlgmr.msra.gmra.mxu0 %v701_v2 }
 0x1e2   : > { %v923_v5 = vpop.f32.mrf.mxu3 }
 0x1e5   : > { %v937_v7 = vpop.f32.mrf.mxu0 }
 0x1ea   : > { %v909_v4 = vpop.f32.mrf.mxu2  ;;  %v925_v14 = vpop.f32.mrf.mxu3 }
 0x1eb   : > { %v910_v6 = vadd.f32 %v1492_v3, %v909_v4 }
 0x1ed   : > { %v924_v8 = vadd.f32 %v923_v5, %v910_v6  ;;  %v939_v16 = vpop.f32.mrf.mxu0 }
 0x1ef   : > { %v938_v9 = vadd.f32 %v937_v7, %v924_v8 }
 0x1f1   : > { %vm942_vm4 = vcmp.ge.f32.partialorder %v938_v9, 0.0  ;;  %v944_v10 = vmul.f32 0.01, %v938_v9 }
 0x1f2   : > { %v911_v11 = vpop.f32.mrf.mxu2 }
 0x1f3   : > { %v946_v12 = vsel %vm942_vm4, %v938_v9, %v944_v10  ;;  %v912_v13 = vadd.f32 %v1492_v3, %v911_v11 }
 0x1f4   : > { %948 = vst [vmem:[%s170_s22] sm:$0xff] %v946_v12 }
 0x1f5   : > { %v926_v15 = vadd.f32 %v925_v14, %v912_v13 }
 0x1f7   : > { %v940_v17 = vadd.f32 %v939_v16, %v926_v15 }
 0x1f9   : > { %vm943_vm5 = vcmp.ge.f32.partialorder %v940_v17, 0.0  ;;  %v945_v18 = vmul.f32 0.01, %v940_v17 }
 0x1fb   : > { %v947_v19 = vsel %vm943_vm5, %v940_v17, %v945_v18 }
 0x1fc   : > { %949 = vst [vmem:[%s170_s22 + $0x8] sm:$0xff] %v947_v19 }
 0x1fd PF: > { %s13_s12 = sadd.s32 1, %s1499_s12  }
 0x1fe   : > { %p10_p4 = scmp.ge.s32.totalorder %s13_s12, 4  }
 0x200   :  { %12 = sbr.rel (!%p10_p4) target bundleno = 1 (0x1), region = 66 }

</bundles_post_ra>
